<compile_context>
chip_gen: v7x
topology: tpu7x:2x2x1
jax: 0.10.0
libtpu: 0.0.40
codegen_flags: <defaults>
</compile_context>

<pallas_src>
import functools

import jax
import jax.numpy as jnp
from jax.experimental import pallas as pl
from jax.experimental.pallas import tpu as pltpu


def _round_up(x, m):
    return (x + m - 1) // m * m


def _convblock_kernel(x_ref, w_ref, shift_ref, o_ref, *,
                      tap_offsets, tile, multi_tile):
    """Fused in-kernel im2col conv + folded-BN shift + ReLU.

    x_ref     : (1, Cin, L_in)       whole padded image (bf16), flat row-major
    w_ref     : (KH*KW, Cout, Cin)   BN-scaled per-tap weights (bf16)
    shift_ref : (Cout, 1)            folded BN/bias shift (f32)
    o_ref     : (1, Cout, TILE)      lane-dense output tile
    """
    cout = o_ref.shape[1]
    if multi_tile:
        # Tile start along the flattened spatial axis (tile is a multiple of 128).
        base = pl.multiple_of(pl.program_id(1) * tile, 128)
    else:
        base = 0  # single tile per batch: fully static slice offsets

    acc = jnp.zeros((cout, tile), jnp.float32)
    # KH*KW tap matmuls accumulated in f32.  At Cout=8 / K=36 the MXU is <2%
    # utilized anyway — this kernel is bandwidth/overhead-bound, so per-tap
    # dots (no patch-block build) are the cheapest correct thing.
    for t, off in enumerate(tap_offsets):
        xs = x_ref[0, :, pl.ds(base + off, tile)]                # (Cin, TILE) bf16
        acc = acc + jnp.dot(w_ref[t], xs,
                            preferred_element_type=jnp.float32)  # (Cout, TILE) f32
    y = jnp.maximum(acc + shift_ref[...], 0.0)                   # shift + ReLU
    o_ref[0] = y.astype(o_ref.dtype)


def _pick_tile(l_valid, batch):
    """Lane-dense spatial tile (multiple of 128, prefer 256-aligned)."""
    if l_valid <= 2048:
        tile = _round_up(l_valid, 128)
    else:
        tile = 1024  # 256-aligned for v6e/v7x MXU, amortizes ~0.35us/step overhead
    m = pl.cdiv(l_valid, tile)
    # v7x has 2 TensorCores: guarantee >= 2 parallel grid steps for B == 1.
    if batch == 1 and m == 1 and tile % 256 == 0:
        tile //= 2
        m = 2
    return tile, m


def conv_block_forward(x_nchw, weight_oihw, conv_bias,
                       bn_gamma, bn_beta, bn_mean, bn_var,
                       *, stride=1, padding=1, eps=1e-5):
    """ConvBlock forward: ReLU(BN(Conv2d(x))).  x is NCHW (PyTorch layout)."""
    B, Cin, H, W = x_nchw.shape
    Cout, _, KH, KW = weight_oihw.shape
    H_pad, W_pad = H + 2 * padding, W + 2 * padding
    out_h = (H_pad - KH) // stride + 1
    out_w = (W_pad - KW) // stride + 1

    # ---- glue: zero-pad + row-major flatten (NO transposes, NO im2col) -----
    rows = H_pad - KH + 1                       # valid vertical window starts
    l_valid = rows * W_pad                      # flat output positions needed
    tile, m_tiles = _pick_tile(l_valid, B)
    l_out = m_tiles * tile
    max_off = (KH - 1) * W_pad + (KW - 1)       # largest tap offset
    l_in = _round_up(max(H_pad * W_pad, l_out + max_off), 128)

    x_pad = jnp.pad(x_nchw, ((0, 0), (0, 0),
                             (padding, padding), (padding, padding)))
    x_flat = x_pad.reshape(B, Cin, H_pad * W_pad)
    x_flat = jnp.pad(x_flat, ((0, 0), (0, 0), (0, l_in - H_pad * W_pad)))
    x_flat = x_flat.astype(jnp.bfloat16)        # halve HBM/VMEM bytes; f32 acc

    # Fold eval-mode BN + conv bias:  y = (scale*W) * x + (bias - mean)*scale + beta
    if conv_bias is None:                       # Conv2d(bias=False) fallback
        conv_bias = jnp.zeros((Cout,), jnp.float32)
    inv_std = 1.0 / jnp.sqrt(bn_var + eps)
    scale = (bn_gamma * inv_std).astype(jnp.float32)                  # (Cout,)
    w_taps = jnp.transpose(weight_oihw, (2, 3, 0, 1)).reshape(KH * KW, Cout, Cin)
    w_taps = (w_taps * scale[None, :, None]).astype(jnp.bfloat16)     # (T, Cout, Cin)
    shift = ((conv_bias - bn_mean) * scale + bn_beta).reshape(Cout, 1)
    shift = shift.astype(jnp.float32)

    tap_offsets = tuple(i * W_pad + j for i in range(KH) for j in range(KW))

    kernel = functools.partial(_convblock_kernel, tap_offsets=tap_offsets,
                               tile=tile, multi_tile=(m_tiles > 1))

    # Advisory cost estimate so XLA overlaps the surrounding glue ops.
    flops = 2 * B * l_out * Cout * Cin * KH * KW
    bytes_accessed = int(x_flat.size * 2 + w_taps.size * 2 + shift.size * 4
                         + B * Cout * l_out * jnp.dtype(x_nchw.dtype).itemsize)
    cost = pl.CostEstimate(flops=flops, transcendentals=0,
                           bytes_accessed=bytes_accessed)

    # VMEM budget: whole padded image (revisited, but double-buffer allocated),
    # double-buffered output tile, plus tiny invariant weights/shift.
    vmem_need = (2 * (Cin * l_in * 2 + Cout * tile * 4)
                 + 2 * (w_taps.size * 2 + shift.size * 4)
                 + Cout * tile * 4)
    cp_kwargs = {"dimension_semantics": ("parallel", "parallel")}
    if vmem_need > 16 * 1024 * 1024:            # raise only when needed (v5e default 16 MiB)
        cp_kwargs["vmem_limit_bytes"] = min(int(vmem_need * 2), 100 * 1024 * 1024)

    out_flat = pl.pallas_call(
        kernel,
        out_shape=jax.ShapeDtypeStruct((B, Cout, l_out), x_nchw.dtype),
        grid_spec=pltpu.PrefetchScalarGridSpec(
            num_scalar_prefetch=0,
            grid=(B, m_tiles),
            in_specs=[
                # Whole padded image: constant over the spatial-tile axis, so it
                # is DMA'd once per batch element.
                pl.BlockSpec((1, Cin, l_in), lambda b, m: (b, 0, 0)),
                pl.BlockSpec((KH * KW, Cout, Cin), lambda b, m: (0, 0, 0)),
                pl.BlockSpec((Cout, 1), lambda b, m: (0, 0)),
            ],
            out_specs=pl.BlockSpec((1, Cout, tile), lambda b, m: (b, 0, m)),
        ),
        compiler_params=pltpu.CompilerParams(**cp_kwargs),
        cost_estimate=cost,
    )(x_flat, w_taps, shift)

    # Un-flatten: keep valid window starts, apply stride, drop wrap-around cols.
    out_grid = out_flat[:, :, :l_valid].reshape(B, Cout, rows, W_pad)
    return out_grid[:, :, ::stride, ::stride][:, :, :out_h, :out_w]


def _reference(x_nchw, weight_oihw, conv_bias,
               bn_gamma, bn_beta, bn_mean, bn_var,
               *, stride=1, padding=1, eps=1e-5):
    """Pure-JAX reference (lax conv, f32) for correctness checking."""
    y = jax.lax.conv_general_dilated(
        x_nchw, weight_oihw, window_strides=(stride, stride),
        padding=[(padding, padding), (padding, padding)],
        dimension_numbers=("NCHW", "OIHW", "NCHW"))
    y = y + conv_bias[None, :, None, None]
    inv_std = 1.0 / jnp.sqrt(bn_var + eps)
    y = (y - bn_mean[None, :, None, None]) * (bn_gamma * inv_std)[None, :, None, None] \
        + bn_beta[None, :, None, None]
    return jnp.maximum(y, 0.0)


if __name__ == "__main__":
    key = jax.random.PRNGKey(0)
    k_x, k_w, k_b = jax.random.split(key, 3)

    # ConvBlock(in_channels=4, out_channels=8, kernel_size=3, padding=1)
    # applied to a (2, 4, 16, 16) NCHW input.
    B, Cin, H, W = 2, 4, 16, 16
    Cout, KH, KW = 8, 3, 3

    x = jax.random.normal(k_x, (B, Cin, H, W), dtype=jnp.float32)

    fan_in = Cin * KH * KW
    bound = 1.0 / (fan_in ** 0.5)
    weight = jax.random.uniform(k_w, (Cout, Cin, KH, KW),
                                minval=-bound, maxval=bound, dtype=jnp.float32)
    conv_bias = jax.random.uniform(k_b, (Cout,),
                                   minval=-bound, maxval=bound, dtype=jnp.float32)
    # BatchNorm2d default init (eval-mode running stats).
    bn_gamma = jnp.ones((Cout,), jnp.float32)
    bn_beta = jnp.zeros((Cout,), jnp.float32)
    bn_mean = jnp.zeros((Cout,), jnp.float32)
    bn_var = jnp.ones((Cout,), jnp.float32)

    out = conv_block_forward(x, weight, conv_bias,
                             bn_gamma, bn_beta, bn_mean, bn_var,
                             stride=1, padding=1)
    out = jax.block_until_ready(out)

    ref = _reference(x, weight, conv_bias, bn_gamma, bn_beta, bn_mean, bn_var,
                     stride=1, padding=1)
    assert out.shape == (B, Cout, H, W), out.shape
    # bf16 operands / f32 accumulation: tolerance loosened vs the pure-f32 path.
    assert jnp.allclose(out, ref, atol=3e-2, rtol=3e-2), \
        float(jnp.max(jnp.abs(out - ref)))

    print("KERNEL_OK")
</pallas_src>

<mosaic_0001>
module attributes {stable_mosaic.version = 11 : i64} {
  func.func @_convblock_kernel(%arg0: i32, %arg1: i32, %arg2: memref<1x4x512xbf16, #tpu.memory_space<vmem>>, %arg3: memref<9x8x4xbf16, #tpu.memory_space<vmem>>, %arg4: memref<8x1xf32, #tpu.memory_space<vmem>>, %arg5: memref<1x8x384xf32, #tpu.memory_space<vmem>>) attributes {dimension_semantics = [#tpu.dimension_semantics<parallel>, #tpu.dimension_semantics<parallel>], iteration_bounds = array<i64: 2, 1>, scalar_prefetch = 0 : i64, scratch_operands = 0 : i64, tpu.core_type = #tpu.core_type<tc>, window_params = [{transform_indices = @transform_0, window_bounds = array<i64: 1, 4, 512>}, {pipeline_mode = #tpu.pipeline_mode<synchronous>, transform_indices = @transform_1, window_bounds = array<i64: 9, 8, 4>}, {pipeline_mode = #tpu.pipeline_mode<synchronous>, transform_indices = @transform_2, window_bounds = array<i64: 8, 1>}, {transform_indices = @transform_3, window_bounds = array<i64: 1, 8, 384>}]} {
    %cst = arith.constant 0.000000e+00 : f32
    %0 = vector.broadcast %cst : f32 to vector<8x384xf32>
    %c0 = arith.constant 0 : index
    %c0_0 = arith.constant 0 : index
    %c0_1 = arith.constant 0 : index
    %1 = vector.load %arg2[%c0, %c0_0, %c0_1] : memref<1x4x512xbf16, #tpu.memory_space<vmem>>, vector<1x4x384xbf16>
    %2 = vector.shape_cast %1 : vector<1x4x384xbf16> to vector<4x384xbf16>
    %c0_2 = arith.constant 0 : index
    %c0_3 = arith.constant 0 : index
    %c0_4 = arith.constant 0 : index
    %3 = vector.load %arg3[%c0_2, %c0_3, %c0_4] : memref<9x8x4xbf16, #tpu.memory_space<vmem>>, vector<1x8x4xbf16>
    %4 = vector.shape_cast %3 : vector<1x8x4xbf16> to vector<8x4xbf16>
    %cst_5 = arith.constant dense<0.000000e+00> : vector<8x384xf32>
    %5 = tpu.matmul %4, %2, %cst_5 {dimension_numbers = #tpu.dot_dimension_numbers<[1], [0], [0], [1], [0, 0, 1, 1], [], []>} : vector<8x4xbf16>, vector<4x384xbf16>, vector<8x384xf32> -> vector<8x384xf32>
    %6 = arith.addf %0, %5 : vector<8x384xf32>
    %c0_6 = arith.constant 0 : index
    %c0_7 = arith.constant 0 : index
    %c1 = arith.constant 1 : index
    %7 = vector.load %arg2[%c0_6, %c0_7, %c1] : memref<1x4x512xbf16, #tpu.memory_space<vmem>>, vector<1x4x384xbf16>
    %8 = vector.shape_cast %7 : vector<1x4x384xbf16> to vector<4x384xbf16>
    %c1_8 = arith.constant 1 : index
    %c0_9 = arith.constant 0 : index
    %c0_10 = arith.constant 0 : index
    %9 = vector.load %arg3[%c1_8, %c0_9, %c0_10] : memref<9x8x4xbf16, #tpu.memory_space<vmem>>, vector<1x8x4xbf16>
    %10 = vector.shape_cast %9 : vector<1x8x4xbf16> to vector<8x4xbf16>
    %cst_11 = arith.constant dense<0.000000e+00> : vector<8x384xf32>
    %11 = tpu.matmul %10, %8, %cst_11 {dimension_numbers = #tpu.dot_dimension_numbers<[1], [0], [0], [1], [0, 0, 1, 1], [], []>} : vector<8x4xbf16>, vector<4x384xbf16>, vector<8x384xf32> -> vector<8x384xf32>
    %12 = arith.addf %6, %11 : vector<8x384xf32>
    %c0_12 = arith.constant 0 : index
    %c0_13 = arith.constant 0 : index
    %c2 = arith.constant 2 : index
    %13 = vector.load %arg2[%c0_12, %c0_13, %c2] : memref<1x4x512xbf16, #tpu.memory_space<vmem>>, vector<1x4x384xbf16>
    %14 = vector.shape_cast %13 : vector<1x4x384xbf16> to vector<4x384xbf16>
    %c2_14 = arith.constant 2 : index
    %c0_15 = arith.constant 0 : index
    %c0_16 = arith.constant 0 : index
    %15 = vector.load %arg3[%c2_14, %c0_15, %c0_16] : memref<9x8x4xbf16, #tpu.memory_space<vmem>>, vector<1x8x4xbf16>
    %16 = vector.shape_cast %15 : vector<1x8x4xbf16> to vector<8x4xbf16>
    %cst_17 = arith.constant dense<0.000000e+00> : vector<8x384xf32>
    %17 = tpu.matmul %16, %14, %cst_17 {dimension_numbers = #tpu.dot_dimension_numbers<[1], [0], [0], [1], [0, 0, 1, 1], [], []>} : vector<8x4xbf16>, vector<4x384xbf16>, vector<8x384xf32> -> vector<8x384xf32>
    %18 = arith.addf %12, %17 : vector<8x384xf32>
    %c0_18 = arith.constant 0 : index
    %c0_19 = arith.constant 0 : index
    %c18 = arith.constant 18 : index
    %19 = vector.load %arg2[%c0_18, %c0_19, %c18] : memref<1x4x512xbf16, #tpu.memory_space<vmem>>, vector<1x4x384xbf16>
    %20 = vector.shape_cast %19 : vector<1x4x384xbf16> to vector<4x384xbf16>
    %c3 = arith.constant 3 : index
    %c0_20 = arith.constant 0 : index
    %c0_21 = arith.constant 0 : index
    %21 = vector.load %arg3[%c3, %c0_20, %c0_21] : memref<9x8x4xbf16, #tpu.memory_space<vmem>>, vector<1x8x4xbf16>
    %22 = vector.shape_cast %21 : vector<1x8x4xbf16> to vector<8x4xbf16>
    %cst_22 = arith.constant dense<0.000000e+00> : vector<8x384xf32>
    %23 = tpu.matmul %22, %20, %cst_22 {dimension_numbers = #tpu.dot_dimension_numbers<[1], [0], [0], [1], [0, 0, 1, 1], [], []>} : vector<8x4xbf16>, vector<4x384xbf16>, vector<8x384xf32> -> vector<8x384xf32>
    %24 = arith.addf %18, %23 : vector<8x384xf32>
    %c0_23 = arith.constant 0 : index
    %c0_24 = arith.constant 0 : index
    %c19 = arith.constant 19 : index
    %25 = vector.load %arg2[%c0_23, %c0_24, %c19] : memref<1x4x512xbf16, #tpu.memory_space<vmem>>, vector<1x4x384xbf16>
    %26 = vector.shape_cast %25 : vector<1x4x384xbf16> to vector<4x384xbf16>
    %c4 = arith.constant 4 : index
    %c0_25 = arith.constant 0 : index
    %c0_26 = arith.constant 0 : index
    %27 = vector.load %arg3[%c4, %c0_25, %c0_26] : memref<9x8x4xbf16, #tpu.memory_space<vmem>>, vector<1x8x4xbf16>
    %28 = vector.shape_cast %27 : vector<1x8x4xbf16> to vector<8x4xbf16>
    %cst_27 = arith.constant dense<0.000000e+00> : vector<8x384xf32>
    %29 = tpu.matmul %28, %26, %cst_27 {dimension_numbers = #tpu.dot_dimension_numbers<[1], [0], [0], [1], [0, 0, 1, 1], [], []>} : vector<8x4xbf16>, vector<4x384xbf16>, vector<8x384xf32> -> vector<8x384xf32>
    %30 = arith.addf %24, %29 : vector<8x384xf32>
    %c0_28 = arith.constant 0 : index
    %c0_29 = arith.constant 0 : index
    %c20 = arith.constant 20 : index
    %31 = vector.load %arg2[%c0_28, %c0_29, %c20] : memref<1x4x512xbf16, #tpu.memory_space<vmem>>, vector<1x4x384xbf16>
    %32 = vector.shape_cast %31 : vector<1x4x384xbf16> to vector<4x384xbf16>
    %c5 = arith.constant 5 : index
    %c0_30 = arith.constant 0 : index
    %c0_31 = arith.constant 0 : index
    %33 = vector.load %arg3[%c5, %c0_30, %c0_31] : memref<9x8x4xbf16, #tpu.memory_space<vmem>>, vector<1x8x4xbf16>
    %34 = vector.shape_cast %33 : vector<1x8x4xbf16> to vector<8x4xbf16>
    %cst_32 = arith.constant dense<0.000000e+00> : vector<8x384xf32>
    %35 = tpu.matmul %34, %32, %cst_32 {dimension_numbers = #tpu.dot_dimension_numbers<[1], [0], [0], [1], [0, 0, 1, 1], [], []>} : vector<8x4xbf16>, vector<4x384xbf16>, vector<8x384xf32> -> vector<8x384xf32>
    %36 = arith.addf %30, %35 : vector<8x384xf32>
    %c0_33 = arith.constant 0 : index
    %c0_34 = arith.constant 0 : index
    %c36 = arith.constant 36 : index
    %37 = vector.load %arg2[%c0_33, %c0_34, %c36] : memref<1x4x512xbf16, #tpu.memory_space<vmem>>, vector<1x4x384xbf16>
    %38 = vector.shape_cast %37 : vector<1x4x384xbf16> to vector<4x384xbf16>
    %c6 = arith.constant 6 : index
    %c0_35 = arith.constant 0 : index
    %c0_36 = arith.constant 0 : index
    %39 = vector.load %arg3[%c6, %c0_35, %c0_36] : memref<9x8x4xbf16, #tpu.memory_space<vmem>>, vector<1x8x4xbf16>
    %40 = vector.shape_cast %39 : vector<1x8x4xbf16> to vector<8x4xbf16>
    %cst_37 = arith.constant dense<0.000000e+00> : vector<8x384xf32>
    %41 = tpu.matmul %40, %38, %cst_37 {dimension_numbers = #tpu.dot_dimension_numbers<[1], [0], [0], [1], [0, 0, 1, 1], [], []>} : vector<8x4xbf16>, vector<4x384xbf16>, vector<8x384xf32> -> vector<8x384xf32>
    %42 = arith.addf %36, %41 : vector<8x384xf32>
    %c0_38 = arith.constant 0 : index
    %c0_39 = arith.constant 0 : index
    %c37 = arith.constant 37 : index
    %43 = vector.load %arg2[%c0_38, %c0_39, %c37] : memref<1x4x512xbf16, #tpu.memory_space<vmem>>, vector<1x4x384xbf16>
    %44 = vector.shape_cast %43 : vector<1x4x384xbf16> to vector<4x384xbf16>
    %c7 = arith.constant 7 : index
    %c0_40 = arith.constant 0 : index
    %c0_41 = arith.constant 0 : index
    %45 = vector.load %arg3[%c7, %c0_40, %c0_41] : memref<9x8x4xbf16, #tpu.memory_space<vmem>>, vector<1x8x4xbf16>
    %46 = vector.shape_cast %45 : vector<1x8x4xbf16> to vector<8x4xbf16>
    %cst_42 = arith.constant dense<0.000000e+00> : vector<8x384xf32>
    %47 = tpu.matmul %46, %44, %cst_42 {dimension_numbers = #tpu.dot_dimension_numbers<[1], [0], [0], [1], [0, 0, 1, 1], [], []>} : vector<8x4xbf16>, vector<4x384xbf16>, vector<8x384xf32> -> vector<8x384xf32>
    %48 = arith.addf %42, %47 : vector<8x384xf32>
    %c0_43 = arith.constant 0 : index
    %c0_44 = arith.constant 0 : index
    %c38 = arith.constant 38 : index
    %49 = vector.load %arg2[%c0_43, %c0_44, %c38] : memref<1x4x512xbf16, #tpu.memory_space<vmem>>, vector<1x4x384xbf16>
    %50 = vector.shape_cast %49 : vector<1x4x384xbf16> to vector<4x384xbf16>
    %c8 = arith.constant 8 : index
    %c0_45 = arith.constant 0 : index
    %c0_46 = arith.constant 0 : index
    %51 = vector.load %arg3[%c8, %c0_45, %c0_46] : memref<9x8x4xbf16, #tpu.memory_space<vmem>>, vector<1x8x4xbf16>
    %52 = vector.shape_cast %51 : vector<1x8x4xbf16> to vector<8x4xbf16>
    %cst_47 = arith.constant dense<0.000000e+00> : vector<8x384xf32>
    %53 = tpu.matmul %52, %50, %cst_47 {dimension_numbers = #tpu.dot_dimension_numbers<[1], [0], [0], [1], [0, 0, 1, 1], [], []>} : vector<8x4xbf16>, vector<4x384xbf16>, vector<8x384xf32> -> vector<8x384xf32>
    %54 = arith.addf %48, %53 : vector<8x384xf32>
    %c0_48 = arith.constant 0 : index
    %c0_49 = arith.constant 0 : index
    %55 = vector.load %arg4[%c0_48, %c0_49] : memref<8x1xf32, #tpu.memory_space<vmem>>, vector<8x1xf32>
    %56 = vector.broadcast %55 : vector<8x1xf32> to vector<8x384xf32>
    %57 = arith.addf %54, %56 : vector<8x384xf32>
    %cst_50 = arith.constant 0.000000e+00 : f32
    %58 = vector.broadcast %cst_50 : f32 to vector<8x384xf32>
    %59 = arith.maximumf %57, %58 : vector<8x384xf32>
    %c0_51 = arith.constant 0 : index
    %c0_52 = arith.constant 0 : index
    %c0_53 = arith.constant 0 : index
    %60 = vector.load %arg5[%c0_51, %c0_52, %c0_53] : memref<1x8x384xf32, #tpu.memory_space<vmem>>, vector<1x8x384xf32>
    %61 = vector.shape_cast %60 : vector<1x8x384xf32> to vector<8x384xf32>
    %62 = vector.shape_cast %59 : vector<8x384xf32> to vector<1x8x384xf32>
    tpu.vector_store %arg5[%c0_51, %c0_52, %c0_53], %62 {strides = array<i32>} : memref<1x8x384xf32, #tpu.memory_space<vmem>>, vector<1x8x384xf32>,
    return
  }
  func.func @transform_0(%arg0: i32, %arg1: i32) -> (i32, i32, i32) {
    %c0_i32 = arith.constant 0 : i32
    %c0_i32_0 = arith.constant 0 : i32
    %c0_i32_1 = arith.constant 0 : i32
    return %arg0, %c0_i32, %c0_i32_0 : i32, i32, i32
  }
  func.func @transform_1(%arg0: i32, %arg1: i32) -> (i32, i32, i32) {
    %c0_i32 = arith.constant 0 : i32
    %c0_i32_0 = arith.constant 0 : i32
    %c0_i32_1 = arith.constant 0 : i32
    %c0_i32_2 = arith.constant 0 : i32
    return %c0_i32, %c0_i32_0, %c0_i32_1 : i32, i32, i32
  }
  func.func @transform_2(%arg0: i32, %arg1: i32) -> (i32, i32) {
    %c0_i32 = arith.constant 0 : i32
    %c0_i32_0 = arith.constant 0 : i32
    %c0_i32_1 = arith.constant 0 : i32
    return %c0_i32, %c0_i32_0 : i32, i32
  }
  func.func @transform_3(%arg0: i32, %arg1: i32) -> (i32, i32, i32) {
    %c0_i32 = arith.constant 0 : i32
    %c0_i32_0 = arith.constant 0 : i32
    return %arg0, %c0_i32, %arg1 : i32, i32, i32
  }
}

</mosaic_0001>

<bundles_post_ra>
// kernel: tpu_custom_call.1
= control target key start
LH: loop header
LB: loop body
LE: loop exit
PB: predicated region body
PF: predicated region fallthrough
CT: control target
= control target key end

     0   :  { %8 = vsyncpa [#allocation3], 0  ;;  %s1969_s0 = inlined_call_operand.vmem [shape: bf16[2,4,512], index: 0, kind: input, shape index: {}]   ;;  %s1970_s1 = inlined_call_operand.vmem [shape: bf16[9,8,4], index: 1, kind: input, shape index: {}]   ;;  %s1971_s2 = inlined_call_operand.vmem [shape: f32[8,1], index: 2, kind: input, shape index: {}]   ;;  %s1972_s3 = inlined_call_operand.hbm [shape: f32[2,8,384], index: 3, kind: output, shape index: {}]  }
   0x1   :  { %10 = vsyncpa [#allocation3 + $0x1], 0  ;;  %s1733_s12 = smov 0   ;;  %s1735_s13 = smov 0  }
   0x2   :  { %s1737_s14 = smov 0   ;;  %s1739_s15 = smov 0  }
   0x3   :  { %s1741_s16 = smov 0   ;;  %s1743_s17 = smov 0  }
   0x4 LB: > { %s1430_s18 = sadd.s32 4294967295, %s1698_s17   ;;  %s1431_s19 = sadd.s32 4294967294, %s1698_s17   ;;  %s1698_s17 = sphi %s1743_s17, %s16_s17   ;;  %s1694_s16 = sphi %s1741_s16, %s1979_s16   ;;  %s1690_s15 = sphi %s1739_s15, %s1978_s15   ;;  %s1686_s14 = sphi %s1737_s14, %s1977_s14   ;;  %s1682_s13 = sphi %s1735_s13, %s1976_s13   ;;  %s1678_s12 = sphi %s1733_s12, %s1975_s12  }
   0x5   : > { %s28_s20 = sadd.s32 1, %s1694_s16  ;;  %s105_s21 = sadd.s32 1, %s1686_s14 }
   0x6   : > { %p30_p0 = scmp.ge.s32.totalorder %s28_s20, 2  ;;  %p115_p1 = scmp.ne.s32.totalorder %s1686_s14, %s1682_s13 }
   0x7   : > { %p116_p2 = scmp.eq.s32.totalorder %s1430_s18, 1  ;;  %p121_p3 = scmp.ne.s32.totalorder %s1682_s13, %s1678_s12 }
   0x8   : > { %s1981_s20 = smov (%p30_p0, %s28_s20), 0  ;;  %p122_p5 = scmp.eq.s32.totalorder %s1431_s19, 1 }
   0x9   : > { %p1773_p4 = por %p116_p2, %p115_p1  ;;  %s100_s23 = ssub.s32 %s1694_s16, %s1981_s20 }
   0xa   : > { %p1434_p6 = scmp.ge.s32.totalorder %s1698_s17, 1  ;;  %p103_p7 = scmp.eq.s32.totalorder %s100_s23, 0 }
   0xb   : > { %p1780_p8 = por %p122_p5, %p121_p3  ;;  %p154_p9 = scmp.lt.s32.totalorder %s1698_s17, 3 }
   0xc   : > { %s1786_s25 = scalar_select %p103_p7, %s1686_s14, %s105_s21  }
   0xd   : > { %p155_p10 = pnand %p1434_p6, %p154_p9 }
   0xe   : > { %p178_p11 = scmp.lt.s32.totalorder (!%p155_p10), %s1690_s15, 1  ;;  %v195_v0 = vlaneseq (!%p155_p10)  ;;  %v1700_v1 = vmov (!%p155_p10), 1983009808   ;;  %v1701_v5 = vmov (!%p155_p10), 0.0   ;;  %v1702_v6 = vmov (!%p155_p10), 0   ;;  %s1704_s4 = smov (!%p155_p10), 127  }
   0xf   : > { %158 = sbr.rel (%p155_p10) target bundleno = 451 (0x1c3), region = 32  ;;  %v193_v2 = vunpack.c.l.s4 (!%p155_p10), %v1700_v1  ;;  %1494 = vmatprep.subr.bf16.mxu1 (!%p155_p10), %v1701_v5  ;;  %266 = vmatprep.mubr.bf16.mxu0 (!%p155_p10), %v1702_v6  ;;  %vm1703_vm0 = vmmov (!%p155_p10), 0   ;;  %s1705_s5 = smov (!%p155_p10), 126   ;;  %v1328_v18 = vld [vmem:[%s1971_s2] sm:$0xff] (!%p155_p10)  ;;  %vm216_vm1 = vcmask (!%p155_p10), 1039360   ;;  %vm224_vm2 = vcmask (!%p155_p10), 1041408  }
  0x10   : > { %v196_v3 = vshrl.u32 (!%p155_p10), %v195_v0, 7  ;;  %1617 = vset.pattern.permute.xlu0 (!%p155_p10), %v1702_v6  ;;  %1496 = vmatprep.mubr.msk.bf16.mxu1 (!%p155_p10), %vm1703_vm0, %v1701_v5  ;;  %s1706_s6 = smov (!%p155_p10), 110   ;;  %s1707_s7 = smov (!%p155_p10), 109   ;;  %v1437_v28 = vld [vmem:[%s1970_s1 + $0x4] sm:$0xf] (!%p155_p10)  ;;  %vm220_vm3 = vcmask (!%p155_p10), 31744  }
  0x11   : > { %v194_v4 = vunpack.c.0.s8 (!%p155_p10), %v193_v2  ;;  %s1708_s8 = smov (!%p155_p10), 108   ;;  %s1709_s9 = smov (!%p155_p10), 92   ;;  %vm454_vm4 = vcmask (!%p155_p10), 1031168   ;;  %v186_v39 = vld [vmem:[%s1970_s1] sm:$0xf] (!%p155_p10)  ;;  %vm583_vm5 = vcmask (!%p155_p10), 900096  }
  0x12   : > { %s1710_s10 = smov (!%p155_p10), 91   ;;  %s1711_s11 = smov (!%p155_p10), 90   ;;  %v1444_v49 = vld [vmem:[%s1970_s1 + $0x8] sm:$0xf] (!%p155_p10)  ;;  %vm712_vm6 = vcmask (!%p155_p10), 891904   ;;  %vm841_vm7 = vcmask (!%p155_p10), 883712  }
  0x13   : > { %v197_v7 = vsub.s32 (!%p155_p10), %v194_v4, %v196_v3  ;;  %v1448_v59 = vld [vmem:[%s1970_s1 + $0xc] sm:$0xf] (!%p155_p10)  ;;  %vm970_vm8 = vcmask (!%p155_p10), 752640   ;;  %vm1099_vm9 = vcmask (!%p155_p10), 744448   ;;  %vm1228_vm10 = vcmask (!%p155_p10), 736256   ;;  %s175_s23 = sand.u32 (!%p155_p10), 1, %s1682_s13  }
  0x16   : > { %s179_s26 = scalar_select %p178_p11, %s1690_s15, 1 }
  0x18   : > { %s1475_s27 = sshll.u32 %s179_s26, 3  ;;  %s1548_s26 = smul.u32 24, %s175_s23 }
  0x19   : > { %s182_s30 = scalar_lea.vmem %s1969_s0, %s1475_s27  ;;  %s1549_s27 = smul.u32 384, %s1690_s15 }
  0x1a   : > { %v187_v8 = vld [vmem:[%s182_s30] sm:$0xff]  ;;  %s177_s28 = scalar_lea.vmem [#allocation2], %s1548_s26  ;;  %s1344_s15 = scalar_lea.sflag [#allocation3], %s175_s23 }
  0x1b   : > { %v185_v9 = vld [vmem:[%s182_s30] sm:$0x3f]  ;;  %v198_v10 = vrot.slane %v187_v8, %v197_v7  ;;  %v191_v11 = vcombine.high %v187_v8, %v187_v8  ;;  %s1360_s29 = sshll.u32 %s177_s28, 4  ;;  %s1922_s29 = int_to_ptr.vmem [resolvable:$true] %s1360_s29 }
  0x1c   : > { %v1798_v12 = vrot.slane %v185_v9, %v197_v7  ;;  %v316_v13 = vcombine.high %v185_v9, %v185_v9 }
  0x1d   : > { %208 = vrot.lane.b32.xlu0 %v198_v10, %s1704_s4  ;;  %v206_v14 = vcombine.high %v198_v10, %v198_v10  ;;  %v205_v15 = vrot.slane %v191_v11, %v197_v7 }
  0x1e   : > { %v1800_v16 = vrot.slane %v316_v13, %v197_v7  ;;  %v331_v22 = vcombine.high %v1798_v12, %v1798_v12  ;;  %v336_v31 = vsel %vm224_vm2, %v1798_v12, 0  ;;  %v1452_v7 = vld [vmem:[%s1970_s1 + $0x10] sm:$0xf] }
  0x1f   : > { %212 = vrot.lane.b32.xlu1 %v205_v15, %s1704_s4  ;;  %v207_v17 = vcombine.high %v205_v15, %v205_v15 }
  0x20   : > { %v342_v33 = vsel %vm224_vm2, %v1800_v16, 0 }
  0x21   : > { %210 = vrot.lane.b32.xlu0 %v206_v14, %s1704_s4 }
  0x23   : > { %214 = vrot.lane.b32.xlu1 %v207_v17, %s1704_s4 }
  0x25   : > { %446 = vrot.lane.b32.xlu0 %v198_v10, %s1705_s5 }
  0x27   : > { %448 = vrot.lane.b32.xlu1 %v206_v14, %s1705_s5 }
  0x29   : > { %450 = vrot.lane.b32.xlu0 %v205_v15, %s1705_s5 }
  0x2b   : > { %452 = vrot.lane.b32.xlu1 %v207_v17, %s1705_s5  ;;  %s1920_s5 = scalar_lea.hbm %s1972_s3, %s1549_s27 }
  0x2d   : > { %575 = vrot.lane.b32.xlu0 %v198_v10, %s1706_s6 }
  0x2f   : > { %577 = vrot.lane.b32.xlu1 %v206_v14, %s1706_s6 }
  0x31   : > { %579 = vrot.lane.b32.xlu0 %v205_v15, %s1706_s6 }
  0x33   : > { %581 = vrot.lane.b32.xlu1 %v207_v17, %s1706_s6  ;;  %s1620_s6 = scalar_lea.vmem %s1922_s29, 384 }
  0x34   : > { %p1621_p12 = scmp.ne.s32.totalorder %s1922_s29, %s1620_s6 }
  0x35   : > { %704 = vrot.lane.b32.xlu0 %v198_v10, %s1707_s7 }
  0x36   : > { %p1622_p13 = pnand %p1621_p12, %p1773_p4 }
  0x37   : > { %706 = vrot.lane.b32.xlu1 %v206_v14, %s1707_s7 }
  0x38   : > { %p1623_p0 = pneg %p1622_p13 }
  0x39   : > { %708 = vrot.lane.b32.xlu0 %v205_v15, %s1707_s7 }
  0x3b   : > { %710 = vrot.lane.b32.xlu1 %v207_v17, %s1707_s7  ;;  %s1712_s7 = smov [#allocation2]  }
  0x3d   : > { %833 = vrot.lane.b32.xlu0 %v198_v10, %s1708_s8 }
  0x3f   : > { %835 = vrot.lane.b32.xlu1 %v206_v14, %s1708_s8 }
  0x41   : > { %837 = vrot.lane.b32.xlu0 %v205_v15, %s1708_s8 }
  0x43   : > { %839 = vrot.lane.b32.xlu1 %v207_v17, %s1708_s8  ;;  %s1624_s8 = sshll.u32 %s1712_s7, 4  ;;  %s1625_s8 = int_to_ptr.vmem [resolvable:$false] %s1624_s8 }
  0x44   : > { %p1627_p1 = scmp.lt.s32.totalorder %s1922_s29, %s1625_s8 }
  0x45   : > { %962 = vrot.lane.b32.xlu0 %v198_v10, %s1709_s9 }
  0x47   : > { %964 = vrot.lane.b32.xlu1 %v206_v14, %s1709_s9 }
  0x49   : > { %966 = vrot.lane.b32.xlu0 %v205_v15, %s1709_s9 }
  0x4b   : > { %968 = vrot.lane.b32.xlu1 %v207_v17, %s1709_s9  ;;  %s1626_s9 = scalar_lea.vmem %s1625_s8, 768 }
  0x4c   : > { %p1628_p2 = scmp.lt.s32.totalorder %s1626_s9, %s1620_s6 }
  0x4d   : > { %1091 = vrot.lane.b32.xlu0 %v198_v10, %s1710_s10 }
  0x4e   : > { %p1629_p3 = por %p1628_p2, %p1627_p1 }
  0x4f   : > { %1093 = vrot.lane.b32.xlu1 %v206_v14, %s1710_s10 }
  0x50   : > { %p1630_p5 = pnand %p1629_p3, %p1623_p0 }
  0x51   : > { %1095 = vrot.lane.b32.xlu0 %v205_v15, %s1710_s10 }
  0x53   : > { %1097 = vrot.lane.b32.xlu1 %v207_v17, %s1710_s10 }
  0x55   : > { %1220 = vrot.lane.b32.xlu0 %v198_v10, %s1711_s11 }
  0x57   : > { %1222 = vrot.lane.b32.xlu1 %v206_v14, %s1711_s11 }
  0x59   : > { %1224 = vrot.lane.b32.xlu0 %v205_v15, %s1711_s11 }
  0x5b   : > { %1226 = vrot.lane.b32.xlu1 %v207_v17, %s1711_s11  ;;  %v1456_v17 = vld [vmem:[%s1970_s1 + $0x14] sm:$0xf] }
  0x5d   : > { %1331 = vperm.xlu0 %1617, %v1328_v18  }
  0x8f   : > { %v209_v19 = vpop.permute.xlu0 %208 }
  0x91   : > { %v213_v20 = vpop.permute.xlu1 %212 }
  0x93   : > { %v211_v21 = vpop.permute.xlu0 %210 }
  0x94   : > { %v218_v23 = vsel %vm216_vm1, %v211_v21, %v213_v20  ;;  %v217_v24 = vsel %vm216_vm1, %v209_v19, %v211_v21 }
  0x95   : > { %1438 = vmatprep.subr.msk.bf16.mxu0 %vm224_vm2, %v218_v23  ;;  %v215_v25 = vpop.permute.xlu1 %214  ;;  %v226_v26 = vsel %vm224_vm2, %v217_v24, 0 }
  0x96   : > { %235 = vmatpush1.bf16.msra.mxu0 %v226_v26  ;;  %v219_v27 = vsel %vm216_vm1, %v213_v20, %v215_v25 }
  0x97   : > { %v232_v29 = vsel %vm224_vm2, %v219_v27, 0  ;;  %v447_v30 = vpop.permute.xlu0 %446  ;;  %1441 = vmatprep.subr.msk.bf16.mxu0 %vm224_vm2, %v331_v22  ;;  %v1460_v27 = vld [vmem:[%s1970_s1 + $0x18] sm:$0xf] }
  0x98   : > { %1495 = vmatpush3.bf16.msra.mxu1 %v232_v29 }
  0x99   : > { %1439 = vmatmul.mubr.msk.bf16.vlgmr.msra.gmra.mrb[0].mxu0 %vm220_vm3, %v1437_v28  ;;  %1500 = vmatprep.subr.bf16.mxu1 %v1701_v5  ;;  %v449_v32 = vpop.permute.xlu1 %448 }
  0x9a   : > { %345 = vmatpush1.bf16.msra.mxu0 %v336_v31  ;;  %376 = vmatprep.mubr.bf16.mxu0 %v1702_v6  ;;  %v455_v35 = vsel %vm454_vm4, %v447_v30, %v449_v32 }
  0x9b   : > { %1497 = vmatmul.mubr.msk.bf16.vlgmr.msra.gmra.mrb[0].mxu1 %vm220_vm3, %v1437_v28  ;;  %v451_v34 = vpop.permute.xlu0 %450  ;;  %v462_v40 = vsel %vm224_vm2, %v455_v35, 0 }
  0x9c   : > { %1501 = vmatpush3.bf16.msra.mxu1 %v342_v33  ;;  %v456_v36 = vsel %vm454_vm4, %v449_v32, %v451_v34  ;;  %1502 = vmatprep.mubr.msk.bf16.mxu1 %vm1703_vm0, %v1701_v5 }
  0x9d   : > { %1445 = vmatprep.subr.msk.bf16.mxu0 %vm224_vm2, %v456_v36  ;;  %v453_v37 = vpop.permute.xlu1 %452  ;;  %1506 = vmatprep.subr.bf16.mxu1 %v1701_v5 }
  0x9e   : > { %v457_v38 = vsel %vm454_vm4, %v451_v34, %v453_v37  ;;  %v1464_v37 = vld [vmem:[%s1970_s1 + $0x1c] sm:$0xf] }
  0x9f   : > { %v576_v41 = vpop.permute.xlu0 %575  ;;  %v468_v42 = vsel %vm224_vm2, %v457_v38, 0 }
  0xa1   : > { %1442 = vmatmul.mubr.msk.bf16.vlgmr.msra.gmra.mrb[4].mxu0 %vm220_vm3, %v186_v39  ;;  %v578_v43 = vpop.permute.xlu1 %577 }
  0xa2   : > { %471 = vmatpush1.bf16.msra.mxu0 %v462_v40  ;;  %502 = vmatprep.mubr.bf16.mxu0 %v1702_v6  ;;  %v584_v45 = vsel %vm583_vm5, %v576_v41, %v578_v43  ;;  %v1468_v40 = vld [vmem:[%s1970_s1 + $0x20] sm:$0xf] }
  0xa3   : > { %1503 = vmatmul.mubr.msk.bf16.vlgmr.msra.gmra.mrb[4].mxu1 %vm220_vm3, %v186_v39  ;;  %v580_v44 = vpop.permute.xlu0 %579  ;;  %v591_v50 = vsel %vm224_vm2, %v584_v45, 0 }
  0xa4   : > { %1507 = vmatpush3.bf16.msra.mxu1 %v468_v42  ;;  %v585_v46 = vsel %vm583_vm5, %v578_v43, %v580_v44  ;;  %1508 = vmatprep.mubr.msk.bf16.mxu1 %vm1703_vm0, %v1701_v5 }
  0xa5   : > { %1449 = vmatprep.subr.msk.bf16.mxu0 %vm224_vm2, %v585_v46  ;;  %v582_v47 = vpop.permute.xlu1 %581  ;;  %1512 = vmatprep.subr.bf16.mxu1 %v1701_v5 }
  0xa6   : > { %v586_v48 = vsel %vm583_vm5, %v580_v44, %v582_v47 }
  0xa7   : > { %v705_v51 = vpop.permute.xlu0 %704  ;;  %v597_v52 = vsel %vm224_vm2, %v586_v48, 0 }
  0xa9   : > { %1446 = vmatmul.mubr.msk.bf16.vlgmr.msra.gmra.mrb[8].mxu0 %vm220_vm3, %v1444_v49  ;;  %v707_v53 = vpop.permute.xlu1 %706 }
  0xaa   : > { %600 = vmatpush1.bf16.msra.mxu0 %v591_v50  ;;  %631 = vmatprep.mubr.bf16.mxu0 %v1702_v6  ;;  %v713_v55 = vsel %vm712_vm6, %v705_v51, %v707_v53 }
  0xab   : > { %1509 = vmatmul.mubr.msk.bf16.vlgmr.msra.gmra.mrb[8].mxu1 %vm220_vm3, %v1444_v49  ;;  %v709_v54 = vpop.permute.xlu0 %708  ;;  %v720_v60 = vsel %vm224_vm2, %v713_v55, 0 }
  0xac   : > { %1513 = vmatpush3.bf16.msra.mxu1 %v597_v52  ;;  %v714_v56 = vsel %vm712_vm6, %v707_v53, %v709_v54  ;;  %1514 = vmatprep.mubr.msk.bf16.mxu1 %vm1703_vm0, %v1701_v5 }
  0xad   : > { %1453 = vmatprep.subr.msk.bf16.mxu0 %vm224_vm2, %v714_v56  ;;  %v711_v57 = vpop.permute.xlu1 %710  ;;  %1518 = vmatprep.subr.bf16.mxu1 %v1701_v5 }
  0xae   : > { %v715_v58 = vsel %vm712_vm6, %v709_v54, %v711_v57 }
  0xaf   : > { %v834_v61 = vpop.permute.xlu0 %833  ;;  %v726_v62 = vsel %vm224_vm2, %v715_v58, 0 }
  0xb1   : > { %1450 = vmatmul.mubr.msk.bf16.vlgmr.msra.gmra.mrb[12].mxu0 %vm220_vm3, %v1448_v59  ;;  %v836_v63 = vpop.permute.xlu1 %835 }
  0xb2   : > { %729 = vmatpush1.bf16.msra.mxu0 %v720_v60  ;;  %760 = vmatprep.mubr.bf16.mxu0 %v1702_v6  ;;  %v842_v1 = vsel %vm841_vm7, %v834_v61, %v836_v63 }
  0xb3   : > { %1515 = vmatmul.mubr.msk.bf16.vlgmr.msra.gmra.mrb[12].mxu1 %vm220_vm3, %v1448_v59  ;;  %v838_v0 = vpop.permute.xlu0 %837  ;;  %v849_v8 = vsel %vm224_vm2, %v842_v1, 0 }
  0xb4   : > { %1519 = vmatpush3.bf16.msra.mxu1 %v726_v62  ;;  %v843_v2 = vsel %vm841_vm7, %v836_v63, %v838_v0  ;;  %1520 = vmatprep.mubr.msk.bf16.mxu1 %vm1703_vm0, %v1701_v5 }
  0xb5   : > { %1457 = vmatprep.subr.msk.bf16.mxu0 %vm224_vm2, %v843_v2  ;;  %v840_v3 = vpop.permute.xlu1 %839  ;;  %1524 = vmatprep.subr.bf16.mxu1 %v1701_v5 }
  0xb6   : > { %v844_v4 = vsel %vm841_vm7, %v838_v0, %v840_v3 }
  0xb7   : > { %v963_v9 = vpop.permute.xlu0 %962  ;;  %v855_v10 = vsel %vm224_vm2, %v844_v4, 0 }
  0xb9   : > { %1454 = vmatmul.mubr.msk.bf16.vlgmr.msra.gmra.mrb[16].mxu0 %vm220_vm3, %v1452_v7  ;;  %v965_v11 = vpop.permute.xlu1 %964 }
  0xba   : > { %858 = vmatpush1.bf16.msra.mxu0 %v849_v8  ;;  %889 = vmatprep.mubr.bf16.mxu0 %v1702_v6  ;;  %v971_v13 = vsel %vm970_vm8, %v963_v9, %v965_v11 }
  0xbb   : > { %1521 = vmatmul.mubr.msk.bf16.vlgmr.msra.gmra.mrb[16].mxu1 %vm220_vm3, %v1452_v7  ;;  %v967_v12 = vpop.permute.xlu0 %966  ;;  %v978_v18 = vsel %vm224_vm2, %v971_v13, 0 }
  0xbc   : > { %1525 = vmatpush3.bf16.msra.mxu1 %v855_v10  ;;  %v972_v14 = vsel %vm970_vm8, %v965_v11, %v967_v12  ;;  %1526 = vmatprep.mubr.msk.bf16.mxu1 %vm1703_vm0, %v1701_v5 }
  0xbd   : > { %1461 = vmatprep.subr.msk.bf16.mxu0 %vm224_vm2, %v972_v14  ;;  %v969_v15 = vpop.permute.xlu1 %968  ;;  %1530 = vmatprep.subr.bf16.mxu1 %v1701_v5 }
  0xbe   : > { %v973_v16 = vsel %vm970_vm8, %v967_v12, %v969_v15 }
  0xbf   : > { %v1092_v19 = vpop.permute.xlu0 %1091  ;;  %v984_v20 = vsel %vm224_vm2, %v973_v16, 0 }
  0xc1   : > { %1458 = vmatmul.mubr.msk.bf16.vlgmr.msra.gmra.mrb[20].mxu0 %vm220_vm3, %v1456_v17  ;;  %v1094_v21 = vpop.permute.xlu1 %1093 }
  0xc2   : > { %987 = vmatpush1.bf16.msra.mxu0 %v978_v18  ;;  %1018 = vmatprep.mubr.bf16.mxu0 %v1702_v6  ;;  %v1100_v23 = vsel %vm1099_vm9, %v1092_v19, %v1094_v21 }
  0xc3   : > { %1527 = vmatmul.mubr.msk.bf16.vlgmr.msra.gmra.mrb[20].mxu1 %vm220_vm3, %v1456_v17  ;;  %v1096_v22 = vpop.permute.xlu0 %1095  ;;  %v1107_v28 = vsel %vm224_vm2, %v1100_v23, 0 }
  0xc4   : > { %1531 = vmatpush3.bf16.msra.mxu1 %v984_v20  ;;  %v1101_v24 = vsel %vm1099_vm9, %v1094_v21, %v1096_v22  ;;  %1532 = vmatprep.mubr.msk.bf16.mxu1 %vm1703_vm0, %v1701_v5 }
  0xc5   : > { %1465 = vmatprep.subr.msk.bf16.mxu0 %vm224_vm2, %v1101_v24  ;;  %v1098_v25 = vpop.permute.xlu1 %1097  ;;  %1536 = vmatprep.subr.bf16.mxu1 %v1701_v5 }
  0xc6   : > { %v1102_v26 = vsel %vm1099_vm9, %v1096_v22, %v1098_v25 }
  0xc7   : > { %v1221_v29 = vpop.permute.xlu0 %1220  ;;  %v1113_v30 = vsel %vm224_vm2, %v1102_v26, 0 }
  0xc9   : > { %1462 = vmatmul.mubr.msk.bf16.vlgmr.msra.gmra.mrb[24].mxu0 %vm220_vm3, %v1460_v27  ;;  %v1223_v31 = vpop.permute.xlu1 %1222 }
  0xca   : > { %1116 = vmatpush1.bf16.msra.mxu0 %v1107_v28  ;;  %1147 = vmatprep.mubr.bf16.mxu0 %v1702_v6  ;;  %v1229_v33 = vsel %vm1228_vm10, %v1221_v29, %v1223_v31 }
  0xcb   : > { %1533 = vmatmul.mubr.msk.bf16.vlgmr.msra.gmra.mrb[24].mxu1 %vm220_vm3, %v1460_v27  ;;  %v1225_v32 = vpop.permute.xlu0 %1224  ;;  %v1236_v38 = vsel %vm224_vm2, %v1229_v33, 0 }
  0xcc   : > { %1537 = vmatpush3.bf16.msra.mxu1 %v1113_v30  ;;  %v1230_v34 = vsel %vm1228_vm10, %v1223_v31, %v1225_v32  ;;  %1538 = vmatprep.mubr.msk.bf16.mxu1 %vm1703_vm0, %v1701_v5 }
  0xcd   : > { %1469 = vmatprep.subr.msk.bf16.mxu0 %vm224_vm2, %v1230_v34  ;;  %v1227_v35 = vpop.permute.xlu1 %1226  ;;  %1542 = vmatprep.subr.bf16.mxu1 %v1701_v5 }
  0xce   : > { %v1231_v36 = vsel %vm1228_vm10, %v1225_v32, %v1227_v35 }
  0xcf   : > { %v1242_v39 = vsel %vm224_vm2, %v1231_v36, 0 }
  0xd1   : > { %1466 = vmatmul.mubr.msk.bf16.vlgmr.msra.gmra.mrb[28].mxu0 %vm220_vm3, %v1464_v37 }
  0xd2   : > { %1245 = vmatpush1.bf16.msra.mxu0 %v1236_v38  ;;  %1276 = vmatprep.mubr.bf16.mxu0 %v1702_v6 }
  0xd3   : > { %1539 = vmatmul.mubr.msk.bf16.vlgmr.msra.gmra.mrb[28].mxu1 %vm220_vm3, %v1464_v37 }
  0xd4   : > { %1543 = vmatpush3.bf16.msra.mxu1 %v1242_v39  ;;  %1544 = vmatprep.mubr.msk.bf16.mxu1 %vm1703_vm0, %v1701_v5 }
  0xd9   : > { %1470 = vmatmul.mubr.msk.bf16.vlgmr.msra.gmra.mrb[32].mxu0 %vm220_vm3, %v1468_v40 }
  0xdb   : > { %1545 = vmatmul.mubr.msk.bf16.vlgmr.msra.gmra.mrb[32].mxu1 %vm220_vm3, %v1468_v40 }
 0x16c   : > { %v268_v41 = vpop.f32.mrb[0].mxu0 }
 0x16d   : > { %v270_v42 = vpop.f32.mrb[1].mxu0 }
 0x16e   : > { %v272_v43 = vpop.f32.mrb[2].mxu0  ;;  %v309_v44 = vpop.f32.mrb[0].mxu1 }
 0x16f   : > { %v273_v45 = vpop.f32.mrb[3].mxu0  ;;  %v1498_v6 = vpop.f32.mrb[1].mxu1 }
 0x170   : > { %v312_v46 = vpop.f32.mrb[2].mxu1 }
 0x171   : > { %v1499_v47 = vpop.f32.mrb[3].mxu1 }
 0x174   : > { %v378_v48 = vpop.f32.mrb[4].mxu0 }
 0x175   : > { %v379_v49 = vadd.f32 %v378_v48, %v268_v41  ;;  %v380_v50 = vpop.f32.mrb[5].mxu0 }
 0x176   : > { %v381_v5 = vadd.f32 %v380_v50, %v270_v42  ;;  %v382_v51 = vpop.f32.mrb[6].mxu0  ;;  %v419_v52 = vpop.f32.mrb[4].mxu1 }
 0x177   : > { %v420_v53 = vadd.f32 %v419_v52, %v309_v44  ;;  %v383_v54 = vpop.f32.mrb[7].mxu0  ;;  %v1504_v55 = vpop.f32.mrb[5].mxu1 }
 0x178   : > { %v422_v56 = vpop.f32.mrb[6].mxu1 }
 0x179   : > { %v1505_v57 = vpop.f32.mrb[7].mxu1 }
 0x17c   : > { %v504_v58 = vpop.f32.mrb[8].mxu0 }
 0x17d   : > { %v551_v59 = vadd.f32 %v504_v58, %v379_v49  ;;  %v506_v60 = vpop.f32.mrb[9].mxu0 }
 0x17e   : > { %v552_v61 = vadd.f32 %v506_v60, %v381_v5  ;;  %v508_v62 = vpop.f32.mrb[10].mxu0  ;;  %v545_v63 = vpop.f32.mrb[8].mxu1 }
 0x17f   : > { %v553_v0 = vadd.f32 %v545_v63, %v420_v53  ;;  %v509_v1 = vpop.f32.mrb[11].mxu0  ;;  %v1510_v2 = vpop.f32.mrb[9].mxu1 }
 0x180   : > { %v548_v3 = vpop.f32.mrb[10].mxu1 }
 0x181   : > { %v1511_v4 = vpop.f32.mrb[11].mxu1 }
 0x184   : > { %v633_v7 = vpop.f32.mrb[12].mxu0 }
 0x185   : > { %v680_v8 = vadd.f32 %v633_v7, %v551_v59  ;;  %v635_v9 = vpop.f32.mrb[13].mxu0 }
 0x186   : > { %v681_v10 = vadd.f32 %v635_v9, %v552_v61  ;;  %v637_v11 = vpop.f32.mrb[14].mxu0  ;;  %v674_v12 = vpop.f32.mrb[12].mxu1 }
 0x187   : > { %v682_v13 = vadd.f32 %v674_v12, %v553_v0  ;;  %v638_v14 = vpop.f32.mrb[15].mxu0  ;;  %v1516_v15 = vpop.f32.mrb[13].mxu1 }
 0x188   : > { %v677_v16 = vpop.f32.mrb[14].mxu1  ;;  %v1332_v61 = vpop.permute.xlu0 %1331 }
 0x189   : > { %v1517_v17 = vpop.f32.mrb[15].mxu1 }
 0x18c   : > { %v762_v18 = vpop.f32.mrb[16].mxu0 }
 0x18d   : > { %v809_v19 = vadd.f32 %v762_v18, %v680_v8  ;;  %v764_v20 = vpop.f32.mrb[17].mxu0 }
 0x18e   : > { %v810_v21 = vadd.f32 %v764_v20, %v681_v10  ;;  %v766_v22 = vpop.f32.mrb[18].mxu0  ;;  %v803_v23 = vpop.f32.mrb[16].mxu1 }
 0x18f   : > { %v811_v24 = vadd.f32 %v803_v23, %v682_v13  ;;  %v767_v25 = vpop.f32.mrb[19].mxu0  ;;  %v1522_v26 = vpop.f32.mrb[17].mxu1 }
 0x190   : > { %v806_v27 = vpop.f32.mrb[18].mxu1 }
 0x191   : > { %v1523_v28 = vpop.f32.mrb[19].mxu1 }
 0x194   : > { %v891_v29 = vpop.f32.mrb[20].mxu0 }
 0x195   : > { %v938_v30 = vadd.f32 %v891_v29, %v809_v19  ;;  %v893_v31 = vpop.f32.mrb[21].mxu0 }
 0x196   : > { %v939_v32 = vadd.f32 %v893_v31, %v810_v21  ;;  %v895_v33 = vpop.f32.mrb[22].mxu0  ;;  %v932_v34 = vpop.f32.mrb[20].mxu1 }
 0x197   : > { %v940_v35 = vadd.f32 %v932_v34, %v811_v24  ;;  %v896_v36 = vpop.f32.mrb[23].mxu0  ;;  %v1528_v37 = vpop.f32.mrb[21].mxu1 }
 0x198   : > { %v935_v38 = vpop.f32.mrb[22].mxu1 }
 0x199   : > { %v1529_v39 = vpop.f32.mrb[23].mxu1 }
 0x19c   : > { %v1020_v40 = vpop.f32.mrb[24].mxu0 }
 0x19d   : > { %v1067_v41 = vadd.f32 %v1020_v40, %v938_v30  ;;  %v1022_v42 = vpop.f32.mrb[25].mxu0 }
 0x19e   : > { %v1068_v43 = vadd.f32 %v1022_v42, %v939_v32  ;;  %v1024_v44 = vpop.f32.mrb[26].mxu0  ;;  %v1061_v45 = vpop.f32.mrb[24].mxu1 }
 0x19f   : > { %v1069_v6 = vadd.f32 %v1061_v45, %v940_v35  ;;  %v1025_v46 = vpop.f32.mrb[27].mxu0  ;;  %v1534_v47 = vpop.f32.mrb[25].mxu1 }
 0x1a0   : > { %v1064_v48 = vpop.f32.mrb[26].mxu1 }
 0x1a1   : > { %v1535_v49 = vpop.f32.mrb[27].mxu1 }
 0x1a4   : > { %v1149_v50 = vpop.f32.mrb[28].mxu0 }
 0x1a5   : > { %v1196_v5 = vadd.f32 %v1149_v50, %v1067_v41  ;;  %v1151_v51 = vpop.f32.mrb[29].mxu0 }
 0x1a6   : > { %v1197_v52 = vadd.f32 %v1151_v51, %v1068_v43  ;;  %v1153_v53 = vpop.f32.mrb[30].mxu0  ;;  %v1190_v54 = vpop.f32.mrb[28].mxu1 }
 0x1a7   : > { %v1198_v55 = vadd.f32 %v1190_v54, %v1069_v6  ;;  %v1154_v56 = vpop.f32.mrb[31].mxu0  ;;  %v1540_v57 = vpop.f32.mrb[29].mxu1 }
 0x1a8   : > { %v1193_v58 = vpop.f32.mrb[30].mxu1 }
 0x1a9   : > { %v1541_v59 = vpop.f32.mrb[31].mxu1 }
 0x1ac   : > { %v1278_v60 = vpop.f32.mrb[32].mxu0 }
 0x1ad   : > { %v1325_v62 = vadd.f32 %v1278_v60, %v1196_v5  ;;  %v1280_v63 = vpop.f32.mrb[33].mxu0 }
 0x1ae   : > { %v1326_v0 = vadd.f32 %v1280_v63, %v1197_v52  ;;  %v1282_v1 = vpop.f32.mrb[34].mxu0  ;;  %v1319_v2 = vpop.f32.mrb[32].mxu1 }
 0x1af   : > { %v1334_v3 = vadd.f32 %v1332_v61, %v1325_v62  ;;  %v1327_v4 = vadd.f32 %v1319_v2, %v1198_v55  ;;  %v1283_v7 = vpop.f32.mrb[35].mxu0  ;;  %v1546_v8 = vpop.f32.mrb[33].mxu1 }
 0x1b0   : > { %v1335_v9 = vadd.f32 %v1332_v61, %v1326_v0  ;;  %v1322_v10 = vpop.f32.mrb[34].mxu1 }
 0x1b1   : > { %v1337_v11 = vmax.f32 %v1334_v3, 0.0  ;;  %v1336_v12 = vadd.f32 %v1332_v61, %v1327_v4  ;;  %v1547_v13 = vpop.f32.mrb[35].mxu1 }
 0x1b2   : > { %v1338_v14 = vmax.f32 %v1335_v9, 0.0 }
 0x1b3   : > { %1340 = vst [vmem:[%s177_s28] sm:$0xff] %v1337_v11  ;;  %v1339_v15 = vmax.f32 %v1336_v12, 0.0 }
 0x1b4   : > { %1341 = vst [vmem:[%s177_s28 + $0x8] sm:$0xff] %v1338_v14 }
 0x1b5   : > { %1342 = vst [vmem:[%s177_s28 + $0x10] sm:$0xff] %v1339_v15 }
 0x1b6   : > { %1633 = shalt.err (!%p1630_p5)
}
 0x1b7   : > { %s1634_s10 = scalar_lea.hbm %s1920_s5, 384  ;;  %s1638_s19 = scalar_lea.hbm %s1972_s3, 768 }
 0x1b8   : > { %p1635_p6 = scmp.ne.s32.totalorder %s1920_s5, %s1634_s10  ;;  %p1639_p10 = scmp.lt.u32.totalorder %s1920_s5, %s1972_s3 }
 0x1b9   : > { %p1640_p11 = scmp.lt.u32.totalorder %s1638_s19, %s1634_s10  ;;  %p1642_p13 = scmp.lt.u32.totalorder %s1634_s10, %s1920_s5 }
 0x1ba   : > { %p1636_p7 = pnand %p1635_p6, %p1773_p4 }
 0x1bb   : > { %p1641_p12 = por %p1640_p11, %p1639_p10 }
 0x1bc   : > { %p1637_p9 = pneg %p1636_p7 }
 0x1bd   : > { %p1643_p0 = por %p1642_p13, %p1641_p12 }
 0x1bf   : > { %p1644_p1 = pnand %p1643_p0, %p1637_p9 }
 0x1c1   : > { %1647 = shalt.err (!%p1644_p1)
}
 0x1c2   : > { %1550 = dma.vmem_to_hbm [thread:$0]  (%p1773_p4), %s1922_s29, 384, %s1920_s5, %s1344_s15  }
 0x1c3 PF: > { %p1556_p2 = scmp.ge.s32.totalorder %s1698_s17, 2  ;;  %s1372_s26 = sand.u32 1, %s1678_s12  }
 0x1c4   : > { %s1373_s27 = scalar_lea.sflag [#allocation3], %s1372_s26 }
 0x1c5   : > { %p1553_p3 = pnand %p1556_p2, %p1780_p8 }
 0x1c7   : > { %1673 = dma.done.wait (!%p1553_p3), %s1373_s27, 384  }
 0x1c8   : > { %1675 = vsyncadd (!%p1553_p3), %s1373_s27, 4294966912  ;;  %s16_s17 = sadd.s32 1, %s1698_s17   ;;  %s1975_s12 = smov %s1682_s13 }
 0x1c9   : > { %p13_p5 = scmp.ge.s32.totalorder %s16_s17, 4   ;;  %s1976_s13 = smov %s1686_s14 }
 0x1ca   : > { %s1977_s14 = smov %s1786_s25  ;;  %s1978_s15 = smov %s1694_s16 }
 0x1cb   : > { %s1979_s16 = smov %s1981_s20  ;;  %15 = sbr.rel (!%p13_p5) target bundleno = 4 (0x4), region = 75 }
 0x1d2   :  { %1378 = vsyncpa [#allocation3], 1 }
 0x1d3   :  { %1380 = vsyncpa [#allocation3 + $0x1], 1 }

</bundles_post_ra>
